<compile_context>
chip_gen: v6e
topology: v6e:2x2x1
jax: 0.10.0
libtpu: 0.0.40
codegen_flags: <defaults>
</compile_context>

<pallas_src>
import math

import jax
import jax.numpy as jnp
from jax.experimental import pallas as pl
from jax.experimental.pallas import tpu as pltpu


def _rnn_step_kernel(x_ref, h_ref,
                     wxh_ref, whh_ref, bh_ref,
                     wxo_ref, who_ref, bo_ref,
                     out_ref, hid_ref):
    """One RNNM step on a (TB,) batch tile.

    hid_ref <- i2h(cat(x, h))
    out_ref <- log_softmax(i2o(cat(x, h)), axis=1)
    """
    # MXU operands in the (bf16) weight dtype; accumulate in f32.
    x = x_ref[...].astype(wxh_ref.dtype)           # (TB, I)
    h = h_ref[...].astype(whh_ref.dtype)           # (TB, H)

    # cat(x, h) @ W == x @ Wx + h @ Wh  (concat-free).
    hidden = (
        jnp.dot(x, wxh_ref[...], preferred_element_type=jnp.float32)
        + jnp.dot(h, whh_ref[...], preferred_element_type=jnp.float32)
        + bh_ref[...]                               # (TB, O), f32
    )
    logits = (
        jnp.dot(x, wxo_ref[...], preferred_element_type=jnp.float32)
        + jnp.dot(h, who_ref[...], preferred_element_type=jnp.float32)
        + bo_ref[...]                               # (TB, O), f32
    )

    # log-softmax over the output axis; all vector math stays f32.
    m = jnp.max(logits, axis=1, keepdims=True)                  # (TB, 1)
    e = jnp.exp(logits - m)
    lse = jnp.log(jnp.sum(e, axis=1, keepdims=True))            # (TB, 1)

    hid_ref[...] = hidden.astype(hid_ref.dtype)
    out_ref[...] = (logits - (m + lse)).astype(out_ref.dtype)


def prepare_params(wh, bh, wo, bo, input_size, param_dtype=jnp.bfloat16):
    """ONE-TIME parameter prep (never per step): split along input rows + transpose.

    wh, wo: PyTorch-layout weights (O, I+H); bh, bo: (O,).
    Returns (wxh, whh, bh, wxo, who, bo):
      wxh/wxo: (I, O) param_dtype, whh/who: (H, O) param_dtype,
      bh/bo:   (1, O) float32 (kept f32 for the VPU add).
    """
    wh_t = wh.T   # (I+H, O)
    wo_t = wo.T
    wxh = wh_t[:input_size].astype(param_dtype)
    whh = wh_t[input_size:].astype(param_dtype)
    wxo = wo_t[:input_size].astype(param_dtype)
    who = wo_t[input_size:].astype(param_dtype)
    bh2 = bh.reshape(1, -1).astype(jnp.float32)
    bo2 = bo.reshape(1, -1).astype(jnp.float32)
    return wxh, whh, bh2, wxo, who, bo2


def _choose_batch_tile(B, block_b):
    """Pick the batch tile.

    - B < 16: one full-extent tile (always layout-legal).
    - otherwise: aim for exactly/at-least 2 grid steps (v7x megacore gets work
      on both TensorCores), rounded up to the 8-sublane multiple, capped at
      block_b (VMEM-derived ceiling).
    """
    assert block_b % 8 == 0, "block_b must be a multiple of 8 sublanes"
    if B < 16:
        return B
    half = (B + 1) // 2
    tb = ((half + 7) // 8) * 8
    return min(tb, block_b)


def rnn_forward(x, hidden, wxh, whh, bh, wxo, who, bo, *, block_b=2048):
    """Single RNNM step. Returns (log_softmax_output, new_hidden), both (B, O)."""
    B, I = x.shape
    H = hidden.shape[1]
    O = wxh.shape[1]

    tb = _choose_batch_tile(B, block_b)
    grid = (pl.cdiv(B, tb),)

    def _resident(shape):
        # Constant index_map -> block is loaded once; Buffered(1) skips the
        # (pointless) second buffer and halves its VMEM footprint.
        return pl.BlockSpec(shape, lambda i: (0, 0), pipeline_mode=pl.Buffered(1))

    out, new_hidden = pl.pallas_call(
        _rnn_step_kernel,
        out_shape=(
            jax.ShapeDtypeStruct((B, O), jnp.float32),   # log_softmax output
            jax.ShapeDtypeStruct((B, O), jnp.float32),   # new hidden
        ),
        grid_spec=pltpu.PrefetchScalarGridSpec(
            num_scalar_prefetch=0,
            grid=grid,
            in_specs=[
                pl.BlockSpec((tb, I), lambda i: (i, 0)),   # x tile (streamed)
                pl.BlockSpec((tb, H), lambda i: (i, 0)),   # hidden tile (streamed)
                _resident((I, O)),                         # i2h weight, x rows
                _resident((H, O)),                         # i2h weight, h rows
                _resident((1, O)),                         # i2h bias
                _resident((I, O)),                         # i2o weight, x rows
                _resident((H, O)),                         # i2o weight, h rows
                _resident((1, O)),                         # i2o bias
            ],
            out_specs=[
                pl.BlockSpec((tb, O), lambda i: (i, 0)),
                pl.BlockSpec((tb, O), lambda i: (i, 0)),
            ],
        ),
        compiler_params=pltpu.CompilerParams(
            dimension_semantics=("parallel",),   # v7x: split batch grid over 2 TCs
            vmem_limit_bytes=32 << 20,           # explicit (v5e default is 16 MiB)
        ),
    )(x, hidden, wxh, whh, bh, wxo, who, bo)

    return out, new_hidden


def init_params(key, input_size, hidden_size, output_size):
    """PyTorch-Linear-style init: U(-1/sqrt(fan_in), 1/sqrt(fan_in)).

    Per the spec, BOTH i2h and i2o map (input_size + hidden_size) -> output_size,
    so the returned hidden has width output_size (same as the original module)."""
    fan_in = input_size + hidden_size
    bound = 1.0 / math.sqrt(fan_in)
    k1, k2, k3, k4 = jax.random.split(key, 4)
    wh = jax.random.uniform(k1, (output_size, fan_in), jnp.float32, -bound, bound)
    bh = jax.random.uniform(k2, (output_size,), jnp.float32, -bound, bound)
    wo = jax.random.uniform(k3, (output_size, fan_in), jnp.float32, -bound, bound)
    bo = jax.random.uniform(k4, (output_size,), jnp.float32, -bound, bound)
    return wh, bh, wo, bo


def _reference(x, h, wxh, whh, bh, wxo, who, bo):
    """Plain-JAX reference mirroring the kernel's bf16-operand / f32-accumulate math."""
    xb = x.astype(jnp.bfloat16).astype(jnp.float32)
    hb = h.astype(jnp.bfloat16).astype(jnp.float32)
    hidden = xb @ wxh.astype(jnp.float32) + hb @ whh.astype(jnp.float32) + bh
    logits = xb @ wxo.astype(jnp.float32) + hb @ who.astype(jnp.float32) + bo
    return jax.nn.log_softmax(logits, axis=1), hidden


if __name__ == "__main__":
    batch = 2
    input_size = 16
    hidden_size = 32
    output_size = 8

    key = jax.random.PRNGKey(0)
    kx, kp = jax.random.split(key)

    x = jax.random.normal(kx, (batch, input_size), jnp.float32)
    h0 = jnp.zeros((batch, hidden_size), jnp.float32)        # init_hidden-style state

    wh, bh, wo, bo = init_params(kp, input_size, hidden_size, output_size)
    params = prepare_params(wh, bh, wo, bo, input_size)       # one-time split/fuse

    out, hidden = rnn_forward(x, h0, *params)
    jax.block_until_ready((out, hidden))

    ref_out, ref_hid = _reference(x, h0, *params)
    assert jnp.allclose(out, ref_out, atol=1e-4, rtol=1e-4), "output mismatch"
    assert jnp.allclose(hidden, ref_hid, atol=1e-4, rtol=1e-4), "hidden mismatch"

    # Larger batch: exercises the >= 2-step parallel grid path (tb=32, grid=(2,)).
    B2 = 64
    x2 = jax.random.normal(jax.random.PRNGKey(1), (B2, input_size), jnp.float32)
    h2 = jax.random.normal(jax.random.PRNGKey(2), (B2, hidden_size), jnp.float32)
    out2, hid2 = rnn_forward(x2, h2, *params)
    jax.block_until_ready((out2, hid2))
    ref_out2, ref_hid2 = _reference(x2, h2, *params)
    assert jnp.allclose(out2, ref_out2, atol=1e-4, rtol=1e-4), "tiled output mismatch"
    assert jnp.allclose(hid2, ref_hid2, atol=1e-4, rtol=1e-4), "tiled hidden mismatch"

    # bf16 activations accepted directly (no wrapper astype pass): results match
    # the f32-input path since MXU operands are cast to bf16 in-kernel anyway.
    out3, hid3 = rnn_forward(x2.astype(jnp.bfloat16), h2.astype(jnp.bfloat16), *params)
    jax.block_until_ready((out3, hid3))
    assert jnp.allclose(out3, out2, atol=1e-4, rtol=1e-4), "bf16-input output mismatch"
    assert jnp.allclose(hid3, hid2, atol=1e-4, rtol=1e-4), "bf16-input hidden mismatch"

    print("KERNEL_OK")
</pallas_src>

<mosaic_0001>
module attributes {stable_mosaic.version = 11 : i64} {
  func.func @_rnn_step_kernel(%arg0: i32, %arg1: memref<2x16xf32, #tpu.memory_space<vmem>>, %arg2: memref<2x32xf32, #tpu.memory_space<vmem>>, %arg3: memref<16x8xbf16, #tpu.memory_space<vmem>>, %arg4: memref<32x8xbf16, #tpu.memory_space<vmem>>, %arg5: memref<1x8xf32, #tpu.memory_space<vmem>>, %arg6: memref<16x8xbf16, #tpu.memory_space<vmem>>, %arg7: memref<32x8xbf16, #tpu.memory_space<vmem>>, %arg8: memref<1x8xf32, #tpu.memory_space<vmem>>, %arg9: memref<2x8xf32, #tpu.memory_space<vmem>>, %arg10: memref<2x8xf32, #tpu.memory_space<vmem>>) attributes {dimension_semantics = [#tpu.dimension_semantics<parallel>], iteration_bounds = array<i64: 1>, scalar_prefetch = 0 : i64, scratch_operands = 0 : i64, tpu.core_type = #tpu.core_type<tc>, window_params = [{transform_indices = @transform_0, window_bounds = array<i64: 2, 16>}, {transform_indices = @transform_1, window_bounds = array<i64: 2, 32>}, {pipeline_mode = #tpu.pipeline_mode<synchronous>, transform_indices = @transform_2, window_bounds = array<i64: 16, 8>}, {pipeline_mode = #tpu.pipeline_mode<synchronous>, transform_indices = @transform_3, window_bounds = array<i64: 32, 8>}, {pipeline_mode = #tpu.pipeline_mode<synchronous>, transform_indices = @transform_4, window_bounds = array<i64: 1, 8>}, {pipeline_mode = #tpu.pipeline_mode<synchronous>, transform_indices = @transform_5, window_bounds = array<i64: 16, 8>}, {pipeline_mode = #tpu.pipeline_mode<synchronous>, transform_indices = @transform_6, window_bounds = array<i64: 32, 8>}, {pipeline_mode = #tpu.pipeline_mode<synchronous>, transform_indices = @transform_7, window_bounds = array<i64: 1, 8>}, {transform_indices = @transform_8, window_bounds = array<i64: 2, 8>}, {transform_indices = @transform_9, window_bounds = array<i64: 2, 8>}]} {
    %c0 = arith.constant 0 : index
    %c0_0 = arith.constant 0 : index
    %0 = vector.load %arg1[%c0, %c0_0] : memref<2x16xf32, #tpu.memory_space<vmem>>, vector<2x16xf32>
    %1 = arith.truncf %0 : vector<2x16xf32> to vector<2x16xbf16>
    %c0_1 = arith.constant 0 : index
    %c0_2 = arith.constant 0 : index
    %2 = vector.load %arg2[%c0_1, %c0_2] : memref<2x32xf32, #tpu.memory_space<vmem>>, vector<2x32xf32>
    %3 = arith.truncf %2 : vector<2x32xf32> to vector<2x32xbf16>
    %c0_3 = arith.constant 0 : index
    %c0_4 = arith.constant 0 : index
    %4 = vector.load %arg3[%c0_3, %c0_4] : memref<16x8xbf16, #tpu.memory_space<vmem>>, vector<16x8xbf16>
    %cst = arith.constant dense<0.000000e+00> : vector<2x8xf32>
    %5 = tpu.matmul %1, %4, %cst {dimension_numbers = #tpu.dot_dimension_numbers<[1], [0], [0], [1], [0, 0, 1, 1], [], []>} : vector<2x16xbf16>, vector<16x8xbf16>, vector<2x8xf32> -> vector<2x8xf32>
    %c0_5 = arith.constant 0 : index
    %c0_6 = arith.constant 0 : index
    %6 = vector.load %arg4[%c0_5, %c0_6] : memref<32x8xbf16, #tpu.memory_space<vmem>>, vector<32x8xbf16>
    %cst_7 = arith.constant dense<0.000000e+00> : vector<2x8xf32>
    %7 = tpu.matmul %3, %6, %cst_7 {dimension_numbers = #tpu.dot_dimension_numbers<[1], [0], [0], [1], [0, 0, 1, 1], [], []>} : vector<2x32xbf16>, vector<32x8xbf16>, vector<2x8xf32> -> vector<2x8xf32>
    %8 = arith.addf %5, %7 : vector<2x8xf32>
    %c0_8 = arith.constant 0 : index
    %c0_9 = arith.constant 0 : index
    %9 = vector.load %arg5[%c0_8, %c0_9] : memref<1x8xf32, #tpu.memory_space<vmem>>, vector<1x8xf32>
    %10 = vector.broadcast %9 : vector<1x8xf32> to vector<2x8xf32>
    %11 = arith.addf %8, %10 : vector<2x8xf32>
    %c0_10 = arith.constant 0 : index
    %c0_11 = arith.constant 0 : index
    %12 = vector.load %arg6[%c0_10, %c0_11] : memref<16x8xbf16, #tpu.memory_space<vmem>>, vector<16x8xbf16>
    %cst_12 = arith.constant dense<0.000000e+00> : vector<2x8xf32>
    %13 = tpu.matmul %1, %12, %cst_12 {dimension_numbers = #tpu.dot_dimension_numbers<[1], [0], [0], [1], [0, 0, 1, 1], [], []>} : vector<2x16xbf16>, vector<16x8xbf16>, vector<2x8xf32> -> vector<2x8xf32>
    %c0_13 = arith.constant 0 : index
    %c0_14 = arith.constant 0 : index
    %14 = vector.load %arg7[%c0_13, %c0_14] : memref<32x8xbf16, #tpu.memory_space<vmem>>, vector<32x8xbf16>
    %cst_15 = arith.constant dense<0.000000e+00> : vector<2x8xf32>
    %15 = tpu.matmul %3, %14, %cst_15 {dimension_numbers = #tpu.dot_dimension_numbers<[1], [0], [0], [1], [0, 0, 1, 1], [], []>} : vector<2x32xbf16>, vector<32x8xbf16>, vector<2x8xf32> -> vector<2x8xf32>
    %16 = arith.addf %13, %15 : vector<2x8xf32>
    %c0_16 = arith.constant 0 : index
    %c0_17 = arith.constant 0 : index
    %17 = vector.load %arg8[%c0_16, %c0_17] : memref<1x8xf32, #tpu.memory_space<vmem>>, vector<1x8xf32>
    %18 = vector.broadcast %17 : vector<1x8xf32> to vector<2x8xf32>
    %19 = arith.addf %16, %18 : vector<2x8xf32>
    %cst_18 = arith.constant dense<0xFF800000> : vector<2xf32>
    %20 = vector.multi_reduction <maximumf>, %19, %cst_18 [1] : vector<2x8xf32> to vector<2xf32>
    %21 = vector.shape_cast %20 : vector<2xf32> to vector<2x1xf32>
    %22 = vector.broadcast %21 : vector<2x1xf32> to vector<2x8xf32>
    %23 = arith.subf %19, %22 : vector<2x8xf32>
    %24 = math.exp %23 : vector<2x8xf32>
    %cst_19 = arith.constant dense<0.000000e+00> : vector<2xf32>
    %25 = vector.multi_reduction <add>, %24, %cst_19 [1] : vector<2x8xf32> to vector<2xf32>
    %26 = vector.shape_cast %25 : vector<2xf32> to vector<2x1xf32>
    %27 = math.log %26 : vector<2x1xf32>
    %c0_20 = arith.constant 0 : index
    %c0_21 = arith.constant 0 : index
    %28 = vector.load %arg10[%c0_20, %c0_21] : memref<2x8xf32, #tpu.memory_space<vmem>>, vector<2x8xf32>
    tpu.vector_store %arg10[%c0_20, %c0_21], %11 {strides = array<i32>} : memref<2x8xf32, #tpu.memory_space<vmem>>, vector<2x8xf32>,
    %29 = arith.addf %21, %27 : vector<2x1xf32>
    %30 = vector.broadcast %29 : vector<2x1xf32> to vector<2x8xf32>
    %31 = arith.subf %19, %30 : vector<2x8xf32>
    %c0_22 = arith.constant 0 : index
    %c0_23 = arith.constant 0 : index
    %32 = vector.load %arg9[%c0_22, %c0_23] : memref<2x8xf32, #tpu.memory_space<vmem>>, vector<2x8xf32>
    tpu.vector_store %arg9[%c0_22, %c0_23], %31 {strides = array<i32>} : memref<2x8xf32, #tpu.memory_space<vmem>>, vector<2x8xf32>,
    return
  }
  func.func @transform_0(%arg0: i32) -> (i32, i32) {
    %c0_i32 = arith.constant 0 : i32
    %c0_i32_0 = arith.constant 0 : i32
    return %arg0, %c0_i32 : i32, i32
  }
  func.func @transform_1(%arg0: i32) -> (i32, i32) {
    %c0_i32 = arith.constant 0 : i32
    %c0_i32_0 = arith.constant 0 : i32
    return %arg0, %c0_i32 : i32, i32
  }
  func.func @transform_2(%arg0: i32) -> (i32, i32) {
    %c0_i32 = arith.constant 0 : i32
    %c0_i32_0 = arith.constant 0 : i32
    %c0_i32_1 = arith.constant 0 : i32
    return %c0_i32, %c0_i32_0 : i32, i32
  }
  func.func @transform_3(%arg0: i32) -> (i32, i32) {
    %c0_i32 = arith.constant 0 : i32
    %c0_i32_0 = arith.constant 0 : i32
    %c0_i32_1 = arith.constant 0 : i32
    return %c0_i32, %c0_i32_0 : i32, i32
  }
  func.func @transform_4(%arg0: i32) -> (i32, i32) {
    %c0_i32 = arith.constant 0 : i32
    %c0_i32_0 = arith.constant 0 : i32
    %c0_i32_1 = arith.constant 0 : i32
    return %c0_i32, %c0_i32_0 : i32, i32
  }
  func.func @transform_5(%arg0: i32) -> (i32, i32) {
    %c0_i32 = arith.constant 0 : i32
    %c0_i32_0 = arith.constant 0 : i32
    %c0_i32_1 = arith.constant 0 : i32
    return %c0_i32, %c0_i32_0 : i32, i32
  }
  func.func @transform_6(%arg0: i32) -> (i32, i32) {
    %c0_i32 = arith.constant 0 : i32
    %c0_i32_0 = arith.constant 0 : i32
    %c0_i32_1 = arith.constant 0 : i32
    return %c0_i32, %c0_i32_0 : i32, i32
  }
  func.func @transform_7(%arg0: i32) -> (i32, i32) {
    %c0_i32 = arith.constant 0 : i32
    %c0_i32_0 = arith.constant 0 : i32
    %c0_i32_1 = arith.constant 0 : i32
    return %c0_i32, %c0_i32_0 : i32, i32
  }
  func.func @transform_8(%arg0: i32) -> (i32, i32) {
    %c0_i32 = arith.constant 0 : i32
    %c0_i32_0 = arith.constant 0 : i32
    return %arg0, %c0_i32 : i32, i32
  }
  func.func @transform_9(%arg0: i32) -> (i32, i32) {
    %c0_i32 = arith.constant 0 : i32
    %c0_i32_0 = arith.constant 0 : i32
    return %arg0, %c0_i32 : i32, i32
  }
}

</mosaic_0001>

<bundles_post_ra>
// kernel: tpu_custom_call.1
= control target key start
LH: loop header
LB: loop body
LE: loop exit
PB: predicated region body
PF: predicated region fallthrough
CT: control target
= control target key end

     0   :  { %15 = vsyncpa [#allocation3], 0  ;;  %v422_v1 = vmov 0.0   ;;  %vm423_vm0 = vmmov 0   ;;  %vm106_vm1 = vcmask 130048   ;;  %vm56_vm2 = vcmask 261120   ;;  %s522_s0 = inlined_call_operand.vmem [shape: f32[2,16], index: 0, kind: input, shape index: {}]   ;;  %s523_s1 = inlined_call_operand.vmem [shape: f32[2,32], index: 1, kind: input, shape index: {}]   ;;  %s524_s2 = inlined_call_operand.vmem [shape: bf16[16,8], index: 2, kind: input, shape index: {}]   ;;  %s525_s3 = inlined_call_operand.vmem [shape: bf16[32,8], index: 3, kind: input, shape index: {}]   ;;  %s526_s4 = inlined_call_operand.vmem [shape: f32[1,8], index: 4, kind: input, shape index: {}]   ;;  %s527_s5 = inlined_call_operand.vmem [shape: bf16[16,8], index: 5, kind: input, shape index: {}]   ;;  %s528_s6 = inlined_call_operand.vmem [shape: bf16[32,8], index: 6, kind: input, shape index: {}]   ;;  %s529_s7 = inlined_call_operand.vmem [shape: f32[1,8], index: 7, kind: input, shape index: {}]   ;;  %s530_s8 = inlined_call_operand.hbm [shape: f32[2,8], index: 8, kind: output, shape index: {0}]   ;;  %s531_s9 = inlined_call_operand.hbm [shape: f32[2,8], index: 9, kind: output, shape index: {1}]  }
   0x1   :  { %v368_v0 = vld [vmem:[%s525_s3 + $0x8] sm:$0xff]   ;;  %336 = vmatprep.subr.bf16.mxu0 %v422_v1  ;;  %344 = vmatprep.subr.bf16.mxu1 %v422_v1  ;;  %v369_v2 = vld [vmem:[%s524_s2] sm:$0xff]  }
   0x2   :  { %337 = vmatpush3.bf16.msra.mxu0 %v368_v0  ;;  %346 = vmatprep.mubr.msk.bf16.mxu1 %vm423_vm0, %v422_v1  ;;  %v34_v3 = vld [vmem:[%s522_s0] sm:$0x3]  ;;  %v371_v6 = vld [vmem:[%s528_s6 + $0x8] sm:$0xff]  }
   0x3   :  { %v370_v4 = vld [vmem:[%s525_s3] sm:$0xff]   ;;  %345 = vmatpush3.bf16.msra.mxu1 %v369_v2  ;;  %338 = vmatprep.subr.bf16.mxu0 %v422_v1  ;;  %v35_v5 = vpack.c.bf16 %v34_v3, %v34_v3 }
   0x4   :  { %350 = vmatprep.subr.bf16.mxu1 %v422_v1  ;;  %340 = vmatprep.mubr.msk.bf16.mxu0 %vm423_vm0, %v422_v1  ;;  %v36_v7 = vld [vmem:[%s523_s1] sm:$0x3] }
   0x5   :  { %v37_v8 = vpack.c.bf16 %v36_v7, %v36_v7  ;;  %v373_v9 = vld [vmem:[%s527_s5] sm:$0xff]  }
   0x6   :  { %347 = vmatmul.mubr.msk.bf16.vlgmr.msra.gmra.mxu1 %vm106_vm1, %v35_v5  ;;  %339 = vmatpush3.bf16.msra.mxu0 %v370_v4 }
   0x7   :  { %16 = vsyncpa [#allocation5], 0  ;;  %351 = vmatpush3.bf16.msra.mxu1 %v371_v6  ;;  %358 = vmatprep.subr.bf16.mxu0 %v422_v1  ;;  %v372_v10 = vld [vmem:[%s528_s6] sm:$0xff]   ;;  %vm270_vm3 = vcmask 58368  }
   0x8   :  { %352 = vmatprep.subr.bf16.mxu1 %v422_v1  ;;  %354 = vmatprep.mubr.msk.bf16.mxu1 %vm423_vm0, %v422_v1  ;;  %v319_v14 = vld [vmem:[%s526_s4] ss:$0 sm:$0xff]  ;;  %s424_s4 = smov [#allocation4]  }
   0x9   :  { %341 = vmatmul.mubr.msk.bf16.vlgmr.msra.gmra.mxu0 %vm56_vm2, %v37_v8  ;;  %v325_v25 = vld [vmem:[%s529_s7] ss:$0 sm:$0xff]  ;;  %s302_s7 = sshll.u32 %s424_s4, 4  ;;  %s303_s7 = int_to_ptr.vmem [resolvable:$true] %s302_s7 }
   0xa   :  { %359 = vmatpush3.bf16.msra.mxu0 %v373_v9  ;;  %360 = vmatprep.mubr.msk.bf16.mxu0 %vm423_vm0, %v422_v1  ;;  %s378_s23 = scalar_lea.vmem %s303_s7, 32  ;;  %p383_p1 = scmp.lt.s32.totalorder %s303_s7, %s303_s7 }
   0xb   :  { %353 = vmatpush3.bf16.msra.mxu1 %v372_v10  ;;  %p379_p0 = scmp.ne.s32.totalorder %s303_s7, %s378_s23  ;;  %p384_p2 = scmp.lt.s32.totalorder %s378_s23, %s378_s23 }
   0xd   :  { %p385_p3 = por %p384_p2, %p383_p1 }
   0xe   :  { %355 = vmatmul.mubr.msk.bf16.vlgmr.msra.gmra.mxu1 %vm56_vm2, %v37_v8 }
   0xf   :  { %p386_p4 = pnand %p385_p3, %p379_p0 }
  0x11   :  { %361 = vmatmul.mubr.msk.bf16.vlgmr.msra.gmra.mxu0 %vm106_vm1, %v35_v5 }
  0xc6   :  { %v144_v11 = vpop.f32.mrf.mxu1 }
  0xc8   :  { %v348_v12 = vpop.f32.mrf.mxu1 }
  0xc9   :  { %v94_v13 = vpop.f32.mrf.mxu0 }
  0xca   :  { %v145_v15 = vadd.f32 %v144_v11, %v94_v13  ;;  %v147_v16 = vpop.f32.mrf.mxu1 }
  0xcb   :  { %v342_v17 = vpop.f32.mrf.mxu0 }
  0xcc   :  { %v157_v18 = vadd.f32 %v319_v14, %v145_v15  ;;  %v349_v19 = vpop.f32.mrf.mxu1 }
  0xcd   :  { %v97_v20 = vpop.f32.mrf.mxu0 }
  0xce   :  { %v210_v21 = vpop.f32.mrf.mxu1  ;;  %282 = vst.msk [vmem:[#allocation4] sm:$0x3] %vm270_vm3, %v157_v18 }
  0xcf   :  { %v343_v22 = vpop.f32.mrf.mxu0 }
  0xd0   :  { %v356_v23 = vpop.f32.mrf.mxu1 }
  0xd1   :  { %v256_v24 = vpop.f32.mrf.mxu0 }
  0xd2   :  { %v213_v26 = vpop.f32.mrf.mxu1  ;;  %v257_v27 = vadd.f32 %v256_v24, %v210_v21 }
  0xd3   :  { %v362_v28 = vpop.f32.mrf.mxu0 }
  0xd4   :  { %v269_v29 = vadd.f32 %v325_v25, %v257_v27  ;;  %v357_v30 = vpop.f32.mrf.mxu1 }
  0xd5   :  { %v259_v31 = vpop.f32.mrf.mxu0 }
  0xd6   :  { %v271_v32 = vsel %vm270_vm3, %v269_v29, -inf }
  0xd7   :  { %v363_v33 = vpop.f32.mrf.mxu0  ;;  %272 = vmax.xlane.f32.xlu0 %v271_v32 }
 0x160   :  { %v273_v34 = vpop.xlane.xlu0 %272 }
 0x161   :  { %v274_v35 = vsub.f32 %v269_v29, %v273_v34 }
 0x163   :  { %v275_v36 = vmul.f32 1.442695, %v274_v35 }
 0x165   :  { %374 = vpow2.f32 %v275_v36 }
 0x172   :  { %v375_v37 = vpop.eup %374 }
 0x173   :  { %v277_v38 = vsel %vm270_vm3, %v375_v37, 0.0 }
 0x174   :  { %278 = vadd.xlane.f32.xlu0 %v277_v38 }
 0x175   :  { %389 = shalt.err (!%p386_p4)
}
 0x176   :  { %305 = dma.vmem_to_hbm [thread:$0]  %s303_s7, 32, %s531_s9, [#allocation5]  }
 0x177   :  { %s425_s26 = smov [#allocation2]  }
 0x178   :  { %s292_s27 = sshll.u32 %s425_s26, 4  ;;  %s293_s27 = int_to_ptr.vmem [resolvable:$true] %s292_s27 }
 0x179   :  { %s398_s28 = scalar_lea.vmem %s293_s27, 32  ;;  %p403_p6 = scmp.lt.s32.totalorder %s293_s27, %s293_s27 }
 0x17a   :  { %p399_p5 = scmp.ne.s32.totalorder %s293_s27, %s398_s28  ;;  %p404_p7 = scmp.lt.s32.totalorder %s398_s28, %s398_s28 }
 0x17c   :  { %p405_p8 = por %p404_p7, %p403_p6 }
 0x17e   :  { %p406_p9 = pnand %p405_p8, %p399_p5 }
 0x1fd   :  { %v279_v39 = vpop.xlane.xlu0 %278 }
 0x1fe   :  { %376 = vlog2.f32 %v279_v39 }
 0x20b   :  { %v377_v40 = vpop.eup %376 }
 0x20c   :  { %v281_v41 = vmul.f32 0.6931472, %v377_v40 }
 0x20e   :  { %v283_v42 = vadd.f32 %v281_v41, %v273_v34 }
 0x210   :  { %v284_v43 = vsub.f32 %v269_v29, %v283_v42 }
 0x212   :  { %285 = vst.msk [vmem:[#allocation2] sm:$0x3] %vm270_vm3, %v284_v43 }
 0x213   :  { %409 = shalt.err (!%p406_p9)
}
 0x214   :  { %295 = dma.vmem_to_hbm [thread:$0]  %s293_s27, 32, %s530_s8, [#allocation3]  }
 0x215   :  { %418 = dma.done.wait [#allocation3], 32  }
 0x216   :  { %419 = vsyncadd [#allocation3], 4294967264 }
 0x217   :  { %420 = dma.done.wait [#allocation5], 32  }
 0x218   :  { %421 = vsyncadd [#allocation5], 4294967264 }
 0x219   :  { %312 = vsyncpa [#allocation3], 1 }
 0x21a   :  { %313 = vsyncpa [#allocation5], 1 }

</bundles_post_ra>
